<compile_context>
chip_gen: v6e
topology: v6e:2x2x1
jax: 0.10.0
libtpu: 0.0.40
codegen_flags: <defaults>
</compile_context>

<pallas_src>
import jax
import jax.numpy as jnp
from jax import lax
from jax.experimental import pallas as pl
from jax.experimental.pallas import tpu as pltpu


# ---------------------------------------------------------------------------
# Pallas kernel: whole BasicBlock for Nb images per grid step
# ---------------------------------------------------------------------------
def _basic_block_kernel(x_ref, w1_ref, w2_ref, sb_ref, o_ref, xs_ref, hs_ref):
    # x_ref : (Nb, H, W*C)  f32   lane-dense NHWC images (channels fastest)
    # w1_ref: (3*W*C, W*C)  bf16  stacked block-banded conv1 weights (kh along K)
    # w2_ref: (3*W*C, W*C)  bf16  stacked block-banded conv2 weights
    # sb_ref: (4, W*C)      f32   [scale1, bias1, scale2, bias2] lane-broadcast
    # o_ref : (Nb, H, W*C)  f32
    # xs_ref, hs_ref: (Nb*(H+2), W*C) bf16 VMEM scratch (row-zero-padded inputs)
    Nb, H, WC = x_ref.shape
    Hp = H + 2
    M = Nb * Hp - 2                      # rows fed to each matmul

    zrow = jnp.zeros((1, WC), jnp.bfloat16)

    # Stage the row-zero-padded, bf16 conv1 input; also (re)zero the pad rows
    # of the conv2 scratch.  Pad rows are rewritten every step (megacore: each
    # core has its own scratch, so a program_id==0 guard would be unsafe).
    for b in range(Nb):
        base = b * Hp
        xs_ref[base:base + 1, :] = zrow
        xs_ref[base + 1:base + 1 + H, :] = x_ref[b].astype(jnp.bfloat16)
        xs_ref[base + H + 1:base + H + 2, :] = zrow
        hs_ref[base:base + 1, :] = zrow
        hs_ref[base + H + 1:base + H + 2, :] = zrow

    # ---- conv1 + bn1 + relu: ONE K = 3*WC matmul ---------------------------
    lhs1 = jnp.concatenate(
        [xs_ref[0:M, :], xs_ref[1:M + 1, :], xs_ref[2:M + 2, :]], axis=1)
    acc1 = jnp.dot(lhs1, w1_ref[...], preferred_element_type=jnp.float32)
    h = jnp.maximum(acc1 * sb_ref[0:1, :] + sb_ref[1:2, :], 0.0)   # (M, WC) f32
    # Only rows base..base+H-1 of h are valid per image; stage them (bf16,
    # single cast) into the padded conv2 scratch.  The garbage rows between
    # images are never written, so the zero separator rows stay intact.
    for b in range(Nb):
        base = b * Hp
        hs_ref[base + 1:base + 1 + H, :] = h[base:base + H, :].astype(jnp.bfloat16)

    # ---- conv2 + bn2 + residual + relu --------------------------------------
    lhs2 = jnp.concatenate(
        [hs_ref[0:M, :], hs_ref[1:M + 1, :], hs_ref[2:M + 2, :]], axis=1)
    acc2 = jnp.dot(lhs2, w2_ref[...], preferred_element_type=jnp.float32)
    y = acc2 * sb_ref[2:3, :] + sb_ref[3:4, :]                     # (M, WC) f32
    for b in range(Nb):
        base = b * Hp
        o_ref[b] = jnp.maximum(y[base:base + H, :] + x_ref[b], 0.0).astype(o_ref.dtype)


# ---------------------------------------------------------------------------
# Parameter-only preprocessing (runs ONCE per set of weights)
# ---------------------------------------------------------------------------
def _make_banded_weights(w_hwio, width):
    """HWIO (3,3,Cin,Cout) -> (3, width*Cin, width*Cout) block-banded bf16.

    For kernel row kh, B[kh][wi*Cin+ci, wo*Cout+co] = w[kh, kw, ci, co] where
    wi == wo + kw - 1 (and 0 <= wi < width), else 0.  Folds the 3 kw taps and
    the width zero-padding into a lane-dense matmul operand.
    NOTE: only ~3/width of the operand is nonzero and the footprint is
    3*(W*C)^2*2 bytes; do not reuse this scheme beyond small C / W (see header).
    """
    kh_n, kw_n, cin, cout = w_hwio.shape
    wi = jnp.arange(width)
    wo = jnp.arange(width)
    k = jnp.arange(kw_n)
    sel = (wi[None, :, None] == (wo[None, None, :] + k[:, None, None] - 1))
    sel = sel.astype(jnp.float32)                          # (3, W, W)
    banded = jnp.einsum("kwv,hkio->hwivo", sel, w_hwio)    # (3, W, Cin, W, Cout)
    return banded.reshape(kh_n, width * cin, width * cout).astype(jnp.bfloat16)


def _fold_bn(conv_bias, gamma, beta, mean, var, eps=1e-5):
    scale = gamma / jnp.sqrt(var + eps)
    bias = (conv_bias - mean) * scale + beta
    return scale, bias


def prepare_params(params, width):
    """Band the conv weights, fold BN, and pre-broadcast scale/bias to the
    lane-dense (W*C,) layout.  Parameter-only; call once and reuse."""
    cin = params["w1"].shape[2]
    WC = width * cin

    w1 = _make_banded_weights(params["w1"], width).reshape(3 * WC, WC)
    w2 = _make_banded_weights(params["w2"], width).reshape(3 * WC, WC)

    sc1, bi1 = _fold_bn(params["b1"], params["bn1_gamma"], params["bn1_beta"],
                        params["bn1_mean"], params["bn1_var"])
    sc2, bi2 = _fold_bn(params["b2"], params["bn2_gamma"], params["bn2_beta"],
                        params["bn2_mean"], params["bn2_var"])
    sb = jnp.stack([jnp.tile(sc1, width), jnp.tile(bi1, width),
                    jnp.tile(sc2, width), jnp.tile(bi2, width)]).astype(jnp.float32)
    return {"w1": w1, "w2": w2, "sb": sb}


def make_params(key, inplanes, planes):
    ks = jax.random.split(key, 10)
    return {
        "w1": jax.random.normal(ks[0], (3, 3, inplanes, planes), jnp.float32) * 0.1,
        "b1": jax.random.normal(ks[1], (planes,), jnp.float32) * 0.1,
        "w2": jax.random.normal(ks[2], (3, 3, planes, planes), jnp.float32) * 0.1,
        "b2": jax.random.normal(ks[3], (planes,), jnp.float32) * 0.1,
        "bn1_gamma": 1.0 + 0.1 * jax.random.normal(ks[4], (planes,), jnp.float32),
        "bn1_beta": 0.1 * jax.random.normal(ks[5], (planes,), jnp.float32),
        "bn1_mean": 0.1 * jax.random.normal(ks[6], (planes,), jnp.float32),
        "bn1_var": jnp.abs(jax.random.normal(ks[7], (planes,), jnp.float32)) + 0.5,
        "bn2_gamma": 1.0 + 0.1 * jax.random.normal(ks[8], (planes,), jnp.float32),
        "bn2_beta": 0.1 * jax.random.normal(ks[9], (planes,), jnp.float32),
        "bn2_mean": jnp.zeros((planes,), jnp.float32),
        "bn2_var": jnp.ones((planes,), jnp.float32),
    }


# ---------------------------------------------------------------------------
# Wrapper / pallas_call
# ---------------------------------------------------------------------------
def _choose_nb(N, H):
    """Images per grid step: grow M = Nb*(H+2) toward the 256-row MXU height
    (v6e/v7x), but keep >= 2 grid steps when the batch allows so both v7x
    TensorCores get work (v5e/v6e are single-TC and simply benefit from the
    larger M / fewer steps)."""
    target_nb = max(1, -(-256 // (H + 2)))      # ceil(256 / (H+2))
    nb = min(N, target_nb)
    if N >= 2:
        nb = max(1, min(nb, N // 2))            # keep at least 2 grid steps
    while N % nb:                               # need an exact blocking
        nb -= 1
    return nb


def basic_block_forward_lane_dense(x_lane, prepared):
    """x_lane: (N, H, W*C) f32, channels fastest. Returns same layout.
    A full network would keep this layout across blocks to avoid transposes."""
    N, H, WC = x_lane.shape
    Nb = _choose_nb(N, H)
    grid = (N // Nb,)

    return pl.pallas_call(
        _basic_block_kernel,
        out_shape=jax.ShapeDtypeStruct((N, H, WC), jnp.float32),
        grid_spec=pltpu.PrefetchScalarGridSpec(
            num_scalar_prefetch=0,
            grid=grid,
            in_specs=[
                pl.BlockSpec((Nb, H, WC), lambda n: (n, 0, 0)),
                pl.BlockSpec((3 * WC, WC), lambda n: (0, 0)),
                pl.BlockSpec((3 * WC, WC), lambda n: (0, 0)),
                pl.BlockSpec((4, WC), lambda n: (0, 0)),
            ],
            out_specs=pl.BlockSpec((Nb, H, WC), lambda n: (n, 0, 0)),
            scratch_shapes=[pltpu.VMEM((Nb * (H + 2), WC), jnp.bfloat16),
                            pltpu.VMEM((Nb * (H + 2), WC), jnp.bfloat16)],
        ),
        compiler_params=pltpu.CompilerParams(
            dimension_semantics=("parallel",),
            vmem_limit_bytes=32 * 1024 * 1024,
        ),
    )(x_lane, prepared["w1"], prepared["w2"], prepared["sb"])


def basic_block_forward(x_nchw, prepared):
    N, C, H, W = x_nchw.shape
    WC = W * C
    # NCHW (PyTorch) -> NHWC -> lane-dense (N, H, W*C), channels fastest.
    x = jnp.transpose(x_nchw, (0, 2, 3, 1)).astype(jnp.float32).reshape(N, H, WC)
    out = basic_block_forward_lane_dense(x, prepared)
    # (N, H, W*C) -> NHWC -> NCHW
    return jnp.transpose(out.reshape(N, H, W, C), (0, 3, 1, 2))


# ---------------------------------------------------------------------------
# Pure-JAX f32 reference (correctness check)
# ---------------------------------------------------------------------------
def _reference_forward(x_nchw, params):
    x = jnp.transpose(x_nchw, (0, 2, 3, 1)).astype(jnp.float32)
    dn = ("NHWC", "HWIO", "NHWC")

    def conv_bn(inp, w, b, g, be, m, v):
        y = lax.conv_general_dilated(inp, w, (1, 1), [(1, 1), (1, 1)],
                                     dimension_numbers=dn) + b
        return (y - m) * (g / jnp.sqrt(v + 1e-5)) + be

    h = jnp.maximum(conv_bn(x, params["w1"], params["b1"], params["bn1_gamma"],
                            params["bn1_beta"], params["bn1_mean"],
                            params["bn1_var"]), 0.0)
    o = conv_bn(h, params["w2"], params["b2"], params["bn2_gamma"],
                params["bn2_beta"], params["bn2_mean"], params["bn2_var"])
    o = jnp.maximum(o + x, 0.0)
    return jnp.transpose(o, (0, 3, 1, 2))


if __name__ == "__main__":
    key = jax.random.PRNGKey(0)
    k_x, k_p = jax.random.split(key)

    # W*C = 128 -> exactly one lane tile; N=4 -> Nb=2 images per grid step,
    # grid=(2,) so both v7x TensorCores get a step.
    N, C, H, W = 4, 8, 16, 16
    x = jax.random.normal(k_x, (N, C, H, W), jnp.float32)
    params = make_params(k_p, inplanes=C, planes=C)

    prepared = prepare_params(params, W)          # parameter-only, done once

    fwd = jax.jit(basic_block_forward)
    out = jax.block_until_ready(fwd(x, prepared))
    ref = jax.block_until_ready(_reference_forward(x, params))

    assert out.shape == (N, C, H, W)
    # bf16 matmul operands (f32 accumulation) vs. an all-f32 reference.
    assert jnp.allclose(out, ref, rtol=3e-2, atol=3e-2), "mismatch vs reference"

    print("KERNEL_OK")
</pallas_src>

<mosaic_0001>
module attributes {stable_mosaic.version = 11 : i64} {
  func.func @_basic_block_kernel(%arg0: i32, %arg1: memref<2x16x128xf32, #tpu.memory_space<vmem>>, %arg2: memref<384x128xbf16, #tpu.memory_space<vmem>>, %arg3: memref<384x128xbf16, #tpu.memory_space<vmem>>, %arg4: memref<4x128xf32, #tpu.memory_space<vmem>>, %arg5: memref<2x16x128xf32, #tpu.memory_space<vmem>>, %arg6: memref<36x128xbf16, #tpu.memory_space<vmem>>, %arg7: memref<36x128xbf16, #tpu.memory_space<vmem>>) attributes {dimension_semantics = [#tpu.dimension_semantics<parallel>], iteration_bounds = array<i64: 2>, scalar_prefetch = 0 : i64, scratch_operands = 2 : i64, tpu.core_type = #tpu.core_type<tc>, window_params = [{transform_indices = @transform_0, window_bounds = array<i64: 2, 16, 128>}, {pipeline_mode = #tpu.pipeline_mode<synchronous>, transform_indices = @transform_1, window_bounds = array<i64: 384, 128>}, {pipeline_mode = #tpu.pipeline_mode<synchronous>, transform_indices = @transform_2, window_bounds = array<i64: 384, 128>}, {pipeline_mode = #tpu.pipeline_mode<synchronous>, transform_indices = @transform_3, window_bounds = array<i64: 4, 128>}, {transform_indices = @transform_4, window_bounds = array<i64: 2, 16, 128>}]} {
    %cst = arith.constant 0.000000e+00 : bf16
    %0 = vector.broadcast %cst : bf16 to vector<1x128xbf16>
    %c0 = arith.constant 0 : index
    %c0_0 = arith.constant 0 : index
    %1 = vector.load %arg6[%c0, %c0_0] : memref<36x128xbf16, #tpu.memory_space<vmem>>, vector<1x128xbf16>
    tpu.vector_store %arg6[%c0, %c0_0], %0 {strides = array<i32>} : memref<36x128xbf16, #tpu.memory_space<vmem>>, vector<1x128xbf16>,
    %c0_1 = arith.constant 0 : index
    %c0_2 = arith.constant 0 : index
    %c0_3 = arith.constant 0 : index
    %2 = vector.load %arg1[%c0_1, %c0_2, %c0_3] : memref<2x16x128xf32, #tpu.memory_space<vmem>>, vector<1x16x128xf32>
    %3 = vector.shape_cast %2 : vector<1x16x128xf32> to vector<16x128xf32>
    %4 = arith.truncf %3 : vector<16x128xf32> to vector<16x128xbf16>
    %c1 = arith.constant 1 : index
    %c0_4 = arith.constant 0 : index
    %5 = vector.load %arg6[%c1, %c0_4] : memref<36x128xbf16, #tpu.memory_space<vmem>>, vector<16x128xbf16>
    tpu.vector_store %arg6[%c1, %c0_4], %4 {strides = array<i32>} : memref<36x128xbf16, #tpu.memory_space<vmem>>, vector<16x128xbf16>,
    %c17 = arith.constant 17 : index
    %c0_5 = arith.constant 0 : index
    %6 = vector.load %arg6[%c17, %c0_5] : memref<36x128xbf16, #tpu.memory_space<vmem>>, vector<1x128xbf16>
    tpu.vector_store %arg6[%c17, %c0_5], %0 {strides = array<i32>} : memref<36x128xbf16, #tpu.memory_space<vmem>>, vector<1x128xbf16>,
    %c0_6 = arith.constant 0 : index
    %c0_7 = arith.constant 0 : index
    %7 = vector.load %arg7[%c0_6, %c0_7] : memref<36x128xbf16, #tpu.memory_space<vmem>>, vector<1x128xbf16>
    tpu.vector_store %arg7[%c0_6, %c0_7], %0 {strides = array<i32>} : memref<36x128xbf16, #tpu.memory_space<vmem>>, vector<1x128xbf16>,
    %c17_8 = arith.constant 17 : index
    %c0_9 = arith.constant 0 : index
    %8 = vector.load %arg7[%c17_8, %c0_9] : memref<36x128xbf16, #tpu.memory_space<vmem>>, vector<1x128xbf16>
    tpu.vector_store %arg7[%c17_8, %c0_9], %0 {strides = array<i32>} : memref<36x128xbf16, #tpu.memory_space<vmem>>, vector<1x128xbf16>,
    %c18 = arith.constant 18 : index
    %c0_10 = arith.constant 0 : index
    %9 = vector.load %arg6[%c18, %c0_10] : memref<36x128xbf16, #tpu.memory_space<vmem>>, vector<1x128xbf16>
    tpu.vector_store %arg6[%c18, %c0_10], %0 {strides = array<i32>} : memref<36x128xbf16, #tpu.memory_space<vmem>>, vector<1x128xbf16>,
    %c1_11 = arith.constant 1 : index
    %c0_12 = arith.constant 0 : index
    %c0_13 = arith.constant 0 : index
    %10 = vector.load %arg1[%c1_11, %c0_12, %c0_13] : memref<2x16x128xf32, #tpu.memory_space<vmem>>, vector<1x16x128xf32>
    %11 = vector.shape_cast %10 : vector<1x16x128xf32> to vector<16x128xf32>
    %12 = arith.truncf %11 : vector<16x128xf32> to vector<16x128xbf16>
    %c19 = arith.constant 19 : index
    %c0_14 = arith.constant 0 : index
    %13 = vector.load %arg6[%c19, %c0_14] : memref<36x128xbf16, #tpu.memory_space<vmem>>, vector<16x128xbf16>
    tpu.vector_store %arg6[%c19, %c0_14], %12 {strides = array<i32>} : memref<36x128xbf16, #tpu.memory_space<vmem>>, vector<16x128xbf16>,
    %c35 = arith.constant 35 : index
    %c0_15 = arith.constant 0 : index
    %14 = vector.load %arg6[%c35, %c0_15] : memref<36x128xbf16, #tpu.memory_space<vmem>>, vector<1x128xbf16>
    tpu.vector_store %arg6[%c35, %c0_15], %0 {strides = array<i32>} : memref<36x128xbf16, #tpu.memory_space<vmem>>, vector<1x128xbf16>,
    %c18_16 = arith.constant 18 : index
    %c0_17 = arith.constant 0 : index
    %15 = vector.load %arg7[%c18_16, %c0_17] : memref<36x128xbf16, #tpu.memory_space<vmem>>, vector<1x128xbf16>
    tpu.vector_store %arg7[%c18_16, %c0_17], %0 {strides = array<i32>} : memref<36x128xbf16, #tpu.memory_space<vmem>>, vector<1x128xbf16>,
    %c35_18 = arith.constant 35 : index
    %c0_19 = arith.constant 0 : index
    %16 = vector.load %arg7[%c35_18, %c0_19] : memref<36x128xbf16, #tpu.memory_space<vmem>>, vector<1x128xbf16>
    tpu.vector_store %arg7[%c35_18, %c0_19], %0 {strides = array<i32>} : memref<36x128xbf16, #tpu.memory_space<vmem>>, vector<1x128xbf16>,
    %c0_20 = arith.constant 0 : index
    %c0_21 = arith.constant 0 : index
    %17 = vector.load %arg6[%c0_20, %c0_21] : memref<36x128xbf16, #tpu.memory_space<vmem>>, vector<34x128xbf16>
    %c1_22 = arith.constant 1 : index
    %c0_23 = arith.constant 0 : index
    %18 = vector.load %arg6[%c1_22, %c0_23] : memref<36x128xbf16, #tpu.memory_space<vmem>>, vector<34x128xbf16>
    %c2 = arith.constant 2 : index
    %c0_24 = arith.constant 0 : index
    %19 = vector.load %arg6[%c2, %c0_24] : memref<36x128xbf16, #tpu.memory_space<vmem>>, vector<34x128xbf16>
    %20 = tpu.concatenate %17, %18, %19 in 1 : vector<34x128xbf16>, vector<34x128xbf16>, vector<34x128xbf16> -> vector<34x384xbf16>
    %c0_25 = arith.constant 0 : index
    %c0_26 = arith.constant 0 : index
    %21 = vector.load %arg2[%c0_25, %c0_26] : memref<384x128xbf16, #tpu.memory_space<vmem>>, vector<384x128xbf16>
    %cst_27 = arith.constant dense<0.000000e+00> : vector<34x128xf32>
    %22 = tpu.matmul %20, %21, %cst_27 {dimension_numbers = #tpu.dot_dimension_numbers<[1], [0], [0], [1], [0, 0, 1, 1], [], []>} : vector<34x384xbf16>, vector<384x128xbf16>, vector<34x128xf32> -> vector<34x128xf32>
    %c0_28 = arith.constant 0 : index
    %c0_29 = arith.constant 0 : index
    %23 = vector.load %arg4[%c0_28, %c0_29] : memref<4x128xf32, #tpu.memory_space<vmem>>, vector<1x128xf32>
    %24 = vector.broadcast %23 : vector<1x128xf32> to vector<34x128xf32>
    %25 = arith.mulf %22, %24 : vector<34x128xf32>
    %c1_30 = arith.constant 1 : index
    %c0_31 = arith.constant 0 : index
    %26 = vector.load %arg4[%c1_30, %c0_31] : memref<4x128xf32, #tpu.memory_space<vmem>>, vector<1x128xf32>
    %27 = vector.broadcast %26 : vector<1x128xf32> to vector<34x128xf32>
    %28 = arith.addf %25, %27 : vector<34x128xf32>
    %cst_32 = arith.constant 0.000000e+00 : f32
    %29 = vector.broadcast %cst_32 : f32 to vector<34x128xf32>
    %30 = arith.maximumf %28, %29 : vector<34x128xf32>
    %31 = vector.extract_strided_slice %30 {offsets = [0, 0], sizes = [16, 128], strides = [1, 1]} : vector<34x128xf32> to vector<16x128xf32>
    %32 = arith.truncf %31 : vector<16x128xf32> to vector<16x128xbf16>
    %c1_33 = arith.constant 1 : index
    %c0_34 = arith.constant 0 : index
    %33 = vector.load %arg7[%c1_33, %c0_34] : memref<36x128xbf16, #tpu.memory_space<vmem>>, vector<16x128xbf16>
    tpu.vector_store %arg7[%c1_33, %c0_34], %32 {strides = array<i32>} : memref<36x128xbf16, #tpu.memory_space<vmem>>, vector<16x128xbf16>,
    %34 = vector.extract_strided_slice %30 {offsets = [18, 0], sizes = [16, 128], strides = [1, 1]} : vector<34x128xf32> to vector<16x128xf32>
    %35 = arith.truncf %34 : vector<16x128xf32> to vector<16x128xbf16>
    %c19_35 = arith.constant 19 : index
    %c0_36 = arith.constant 0 : index
    %36 = vector.load %arg7[%c19_35, %c0_36] : memref<36x128xbf16, #tpu.memory_space<vmem>>, vector<16x128xbf16>
    tpu.vector_store %arg7[%c19_35, %c0_36], %35 {strides = array<i32>} : memref<36x128xbf16, #tpu.memory_space<vmem>>, vector<16x128xbf16>,
    %c0_37 = arith.constant 0 : index
    %c0_38 = arith.constant 0 : index
    %37 = vector.load %arg7[%c0_37, %c0_38] : memref<36x128xbf16, #tpu.memory_space<vmem>>, vector<34x128xbf16>
    %c1_39 = arith.constant 1 : index
    %c0_40 = arith.constant 0 : index
    %38 = vector.load %arg7[%c1_39, %c0_40] : memref<36x128xbf16, #tpu.memory_space<vmem>>, vector<34x128xbf16>
    %c2_41 = arith.constant 2 : index
    %c0_42 = arith.constant 0 : index
    %39 = vector.load %arg7[%c2_41, %c0_42] : memref<36x128xbf16, #tpu.memory_space<vmem>>, vector<34x128xbf16>
    %40 = tpu.concatenate %37, %38, %39 in 1 : vector<34x128xbf16>, vector<34x128xbf16>, vector<34x128xbf16> -> vector<34x384xbf16>
    %c0_43 = arith.constant 0 : index
    %c0_44 = arith.constant 0 : index
    %41 = vector.load %arg3[%c0_43, %c0_44] : memref<384x128xbf16, #tpu.memory_space<vmem>>, vector<384x128xbf16>
    %cst_45 = arith.constant dense<0.000000e+00> : vector<34x128xf32>
    %42 = tpu.matmul %40, %41, %cst_45 {dimension_numbers = #tpu.dot_dimension_numbers<[1], [0], [0], [1], [0, 0, 1, 1], [], []>} : vector<34x384xbf16>, vector<384x128xbf16>, vector<34x128xf32> -> vector<34x128xf32>
    %c2_46 = arith.constant 2 : index
    %c0_47 = arith.constant 0 : index
    %43 = vector.load %arg4[%c2_46, %c0_47] : memref<4x128xf32, #tpu.memory_space<vmem>>, vector<1x128xf32>
    %44 = vector.broadcast %43 : vector<1x128xf32> to vector<34x128xf32>
    %45 = arith.mulf %42, %44 : vector<34x128xf32>
    %c3 = arith.constant 3 : index
    %c0_48 = arith.constant 0 : index
    %46 = vector.load %arg4[%c3, %c0_48] : memref<4x128xf32, #tpu.memory_space<vmem>>, vector<1x128xf32>
    %47 = vector.broadcast %46 : vector<1x128xf32> to vector<34x128xf32>
    %48 = arith.addf %45, %47 : vector<34x128xf32>
    %49 = vector.extract_strided_slice %48 {offsets = [0, 0], sizes = [16, 128], strides = [1, 1]} : vector<34x128xf32> to vector<16x128xf32>
    %c0_49 = arith.constant 0 : index
    %c0_50 = arith.constant 0 : index
    %c0_51 = arith.constant 0 : index
    %50 = vector.load %arg1[%c0_49, %c0_50, %c0_51] : memref<2x16x128xf32, #tpu.memory_space<vmem>>, vector<1x16x128xf32>
    %51 = vector.shape_cast %50 : vector<1x16x128xf32> to vector<16x128xf32>
    %52 = arith.addf %49, %51 : vector<16x128xf32>
    %cst_52 = arith.constant 0.000000e+00 : f32
    %53 = vector.broadcast %cst_52 : f32 to vector<16x128xf32>
    %54 = arith.maximumf %52, %53 : vector<16x128xf32>
    %c0_53 = arith.constant 0 : index
    %c0_54 = arith.constant 0 : index
    %c0_55 = arith.constant 0 : index
    %55 = vector.load %arg5[%c0_53, %c0_54, %c0_55] : memref<2x16x128xf32, #tpu.memory_space<vmem>>, vector<1x16x128xf32>
    %56 = vector.shape_cast %55 : vector<1x16x128xf32> to vector<16x128xf32>
    %57 = vector.shape_cast %54 : vector<16x128xf32> to vector<1x16x128xf32>
    tpu.vector_store %arg5[%c0_53, %c0_54, %c0_55], %57 {strides = array<i32>} : memref<2x16x128xf32, #tpu.memory_space<vmem>>, vector<1x16x128xf32>,
    %58 = vector.extract_strided_slice %48 {offsets = [18, 0], sizes = [16, 128], strides = [1, 1]} : vector<34x128xf32> to vector<16x128xf32>
    %c1_56 = arith.constant 1 : index
    %c0_57 = arith.constant 0 : index
    %c0_58 = arith.constant 0 : index
    %59 = vector.load %arg1[%c1_56, %c0_57, %c0_58] : memref<2x16x128xf32, #tpu.memory_space<vmem>>, vector<1x16x128xf32>
    %60 = vector.shape_cast %59 : vector<1x16x128xf32> to vector<16x128xf32>
    %61 = arith.addf %58, %60 : vector<16x128xf32>
    %cst_59 = arith.constant 0.000000e+00 : f32
    %62 = vector.broadcast %cst_59 : f32 to vector<16x128xf32>
    %63 = arith.maximumf %61, %62 : vector<16x128xf32>
    %c1_60 = arith.constant 1 : index
    %c0_61 = arith.constant 0 : index
    %c0_62 = arith.constant 0 : index
    %64 = vector.load %arg5[%c1_60, %c0_61, %c0_62] : memref<2x16x128xf32, #tpu.memory_space<vmem>>, vector<1x16x128xf32>
    %65 = vector.shape_cast %64 : vector<1x16x128xf32> to vector<16x128xf32>
    %66 = vector.shape_cast %63 : vector<16x128xf32> to vector<1x16x128xf32>
    tpu.vector_store %arg5[%c1_60, %c0_61, %c0_62], %66 {strides = array<i32>} : memref<2x16x128xf32, #tpu.memory_space<vmem>>, vector<1x16x128xf32>,
    return
  }
  func.func @transform_0(%arg0: i32) -> (i32, i32, i32) {
    %c0_i32 = arith.constant 0 : i32
    %c0_i32_0 = arith.constant 0 : i32
    %c0_i32_1 = arith.constant 0 : i32
    return %arg0, %c0_i32, %c0_i32_0 : i32, i32, i32
  }
  func.func @transform_1(%arg0: i32) -> (i32, i32) {
    %c0_i32 = arith.constant 0 : i32
    %c0_i32_0 = arith.constant 0 : i32
    %c0_i32_1 = arith.constant 0 : i32
    return %c0_i32, %c0_i32_0 : i32, i32
  }
  func.func @transform_2(%arg0: i32) -> (i32, i32) {
    %c0_i32 = arith.constant 0 : i32
    %c0_i32_0 = arith.constant 0 : i32
    %c0_i32_1 = arith.constant 0 : i32
    return %c0_i32, %c0_i32_0 : i32, i32
  }
  func.func @transform_3(%arg0: i32) -> (i32, i32) {
    %c0_i32 = arith.constant 0 : i32
    %c0_i32_0 = arith.constant 0 : i32
    %c0_i32_1 = arith.constant 0 : i32
    return %c0_i32, %c0_i32_0 : i32, i32
  }
  func.func @transform_4(%arg0: i32) -> (i32, i32, i32) {
    %c0_i32 = arith.constant 0 : i32
    %c0_i32_0 = arith.constant 0 : i32
    %c0_i32_1 = arith.constant 0 : i32
    return %arg0, %c0_i32, %c0_i32_0 : i32, i32, i32
  }
}

</mosaic_0001>

<bundles_post_ra>
// kernel: basic_block_forward.1
= control target key start
LH: loop header
LB: loop body
LE: loop exit
PB: predicated region body
PF: predicated region fallthrough
CT: control target
= control target key end

     0   :  { %s1621_s15 = smov 0   ;;  %s1974_s0 = inlined_call_operand.vmem [shape: f32[4,16,128], index: 0, kind: input, shape index: {}]   ;;  %s1975_s1 = inlined_call_operand.vmem [shape: bf16[384,128], index: 1, kind: input, shape index: {}]   ;;  %s1976_s2 = inlined_call_operand.vmem [shape: bf16[384,128], index: 2, kind: input, shape index: {}]   ;;  %s1977_s3 = inlined_call_operand.vmem [shape: f32[4,128], index: 3, kind: input, shape index: {}]   ;;  %s1978_s4 = inlined_call_operand.vmem [shape: f32[4,16,128], index: 4, kind: output, shape index: {}]  }
   0x1 LB: > { %s1270_s16 = sadd.s32 4294967295, %s1592_s15   ;;  %p1274_p0 = scmp.ge.s32.totalorder %s1592_s15, 1  ;;  %s1592_s15 = sphi %s1621_s15, %s14_s15  }
   0x2   : > { %p164_p1 = scmp.lt.s32.totalorder %s1592_s15, 3 }
   0x4   : > { %p165_p2 = pnand %p1274_p0, %p164_p1 }
   0x5   : > { %s1275_s7 = sshll.u32 (!%p165_p2), %s1270_s16, 1 }
   0x6   : > { %168 = sbr.rel (%p165_p2) target bundleno = 517 (0x205), region = 36  ;;  %p193_p3 = scmp.lt.s32.totalorder (!%p165_p2), %s1275_s7, 3 }
   0xb   : > { %v1528_v0 = vld [vmem:[%s1975_s1 + $0xb8] sm:$0xff]   ;;  %v1594_v1 = vmov 0.0   ;;  %vm1595_vm0 = vmmov 0   ;;  %v1531_v4 = vld [vmem:[%s1975_s1 + $0xb0] sm:$0xff]   ;;  %v1534_v7 = vld [vmem:[%s1975_s1 + $0xa8] sm:$0xff]   ;;  %s1998_s7 = smov (!%p193_p3, %s1275_s7), 3 }
   0xc   : > { %1462 = vmatprep.subr.bf16.mxu1 %v1594_v1  ;;  %v1529_v2 = vld [vmem:[%s1975_s1 + $0x78] sm:$0xff]   ;;  %1478 = vmatprep.mubr.msk.bf16.mxu1 %vm1595_vm0, %v1594_v1  ;;  %v1532_v5 = vld [vmem:[%s1975_s1 + $0x70] sm:$0xff]   ;;  %v1535_v8 = vld [vmem:[%s1975_s1 + $0x68] sm:$0xff]   ;;  %s1361_s27 = sshll.u32 %s1998_s7, 4  ;;  %vm207_vm1 = vcmask 1040384   ;;  %vm243_vm2 = vcmask 1043456  }
   0xd   : > { %1463 = vmatpush3.bf16.msra.mxu1 %v1528_v0  ;;  %v1530_v3 = vld [vmem:[%s1975_s1 + $0x38] sm:$0xff]   ;;  %1372 = vmatprep.subr.bf16.mxu0 %v1529_v2  ;;  %v1533_v6 = vld [vmem:[%s1975_s1 + $0x30] sm:$0xff]   ;;  %v1536_v9 = vld [vmem:[%s1975_s1 + $0x28] sm:$0xff]   ;;  %s1702_s9 = scalar_lea.vmem %s1974_s0, %s1361_s27  ;;  %vm263_vm3 = vcmask 1041409   ;;  %vm208_vm4 = vsmask.f32 256 }
   0xe   : > { %1464 = vmatprep.subr.bf16.mxu1 %v1594_v1  ;;  %1373 = vmatpush3.bf16.msra.mxu0 %v1530_v3  ;;  %v1537_v10 = vld [vmem:[%s1975_s1 + $0xa0] sm:$0xff]   ;;  %v1541_v13 = vld [vmem:[%s1975_s1 + $0x58] sm:$0xff]   ;;  %v1544_v16 = vld [vmem:[%s1975_s1 + $0x50] sm:$0xff]   ;;  %vm221_vm6 = vsmask.f32 4368  ;;  %vm302_vm7 = vcmask 1043457  }
   0xf   : > { %1374 = vmatprep.subr.bf16.mxu0 %v1532_v5  ;;  %v1538_v11 = vld [vmem:[%s1975_s1 + $0x60] sm:$0xff]   ;;  %v1540_v14 = vld [vmem:[%s1975_s1 + $0x98] sm:$0xff]   ;;  %v1543_v17 = vld [vmem:[%s1975_s1 + $0x90] sm:$0xff]   ;;  %vm264_vm8 = vsmask.f32 1280 }
  0x10   : > { %v1539_v12 = vld [vmem:[%s1975_s1 + $0x20] sm:$0xff]   ;;  %v1542_v15 = vld [vmem:[%s1975_s1 + $0x18] sm:$0xff]   ;;  %v1545_v18 = vld [vmem:[%s1975_s1 + $0x10] sm:$0xff]   ;;  %vm244_vm9 = vsmask.f32 7938 }
  0x11   : > { %1465 = vmatpush3.bf16.msra.mxu1 %v1531_v4  ;;  %v1547_v19 = vld [vmem:[%s1975_s1 + $0x48] sm:$0xff]   ;;  %v210_v22 = vld [vmem:[#allocation2] sm:$0x1]  ;;  %vm1725_vm5 = vmand %vm207_vm1, %vm208_vm4  ;;  %vm278_vm10 = vsmask.f32 5392 }
  0x12   : > { %1466 = vmatprep.subr.bf16.mxu1 %v1594_v1  ;;  %1375 = vmatpush3.bf16.msra.mxu0 %v1533_v6  ;;  %v1546_v20 = vld [vmem:[%s1975_s1 + $0x88] sm:$0xff]   ;;  %v1712_v23 = vld [vmem:[%s1702_s9] sm:$0xff]  ;;  %v211_v30 = vsel %vm1725_vm5, 0, %v210_v22  ;;  %v1736_v32 = vld [vmem:[%s1702_s9 + $0x10] sm:$0xff]  ;;  %vm303_vm12 = vsmask.f32 7942 }
  0x13   : > { %1376 = vmatprep.subr.bf16.mxu0 %v1535_v8  ;;  %v1548_v21 = vld [vmem:[%s1975_s1 + $0x8] sm:$0xff]   ;;  %v1549_v25 = vld [vmem:[%s1975_s1 + $0x80] sm:$0xff]   ;;  %v1363_v28 = vpack.c.bf16 %v1712_v23, %v1712_v23  ;;  %212 = vst [vmem:[#allocation2] sm:$0x1] %v211_v30  ;;  %v1743_v38 = vld [vmem:[%s1702_s9 + $0x18] sm:$0xff]  ;;  %v1365_v40 = vpack.c.bf16 %v1736_v32, %v1736_v32 }
  0x14   : > { %v1715_v24 = vld [vmem:[%s1702_s9 + $0x8] sm:$0xff]  ;;  %v1550_v26 = vld [vmem:[%s1975_s1 + $0x40] sm:$0xff]   ;;  %v1366_v41 = vpack.c.bf16 %v1743_v38, %v1743_v38  ;;  %vm1751_vm11 = vmand %vm263_vm3, %vm264_vm8  ;;  %s1960_s9 = scalar_lea.vmem %s1978_s4, %s1361_s27 }
  0x15   : > { %1467 = vmatpush3.bf16.msra.mxu1 %v1534_v7  ;;  %v1364_v29 = vpack.c.bf16 %v1715_v24, %v1715_v24  ;;  %v266_v31 = vld [vmem:[#allocation2 + $0x8] sm:$0x2]  ;;  %v1551_v33 = vld [vmem:[%s1975_s1] sm:$0xff]   ;;  %v224_v34 = vshrl.u32 %v1363_v28, 16  ;;  %v227_v35 = vshll.u32 %v1363_v28, 16  ;;  %vm1757_vm13 = vmor %vm208_vm4, %vm221_vm6  ;;  %v281_v47 = vshrl.u32 %v1365_v40, 16 }
  0x16   : > { %1468 = vmatprep.subr.bf16.mxu1 %v1594_v1  ;;  %1377 = vmatpush3.bf16.msra.mxu0 %v1536_v9  ;;  %v250_v39 = vld [vmem:[#allocation2 + $0x8] sm:$0x1]  ;;  %v267_v46 = vsel %vm1751_vm11, 0, %v266_v31  ;;  %v284_v48 = vshll.u32 %v1365_v40, 16  ;;  %v290_v49 = vshrl.u32 %v1366_v41, 16  ;;  %vm1766_vm14 = vmand %vm243_vm2, %vm244_vm9  ;;  %v293_v58 = vshll.u32 %v1366_v41, 16 }
  0x17   : > { %1378 = vmatprep.subr.bf16.mxu0 %v1538_v11  ;;  %v232_v36 = vshrl.u32 %v1364_v29, 16  ;;  %v235_v37 = vshll.u32 %v1364_v29, 16  ;;  %v226_v42 = vrot.slane %v224_v34, 7  ;;  %268 = vst [vmem:[#allocation2 + $0x8] sm:$0x2] %v267_v46  ;;  %v283_v55 = vrot.slane %v281_v47, 6  ;;  %vm1776_vm15 = vmor %vm264_vm8, %vm278_vm10 }
  0x18   : > { %v286_v56 = vrot.slane %v284_v48, 7  ;;  %v292_v57 = vrot.slane %v290_v49, 6  ;;  %vm309_vm2 = vcmask 1041408   ;;  %v295_v0 = vrot.slane %v293_v58, 7  ;;  %vm1782_vm4 = vmand %vm302_vm7, %vm303_vm12  ;;  %v311_v4 = vld [vmem:[#allocation2 + $0x10] sm:$0x3] }
  0x19   : > { %1469 = vmatpush3.bf16.msra.mxu1 %v1537_v10  ;;  %v234_v43 = vrot.slane %v232_v36, 7  ;;  %v229_v50 = vor.u32 %v227_v35, %v226_v42  ;;  %v230_v51 = vrot.slane %v226_v42, 4  ;;  %vm1790_vm6 = vmand %vm309_vm2, %vm264_vm8  ;;  %vm380_vm7 = vcmask 1046528   ;;  %v318_v61 = vld [vmem:[#allocation3 + $0x8] sm:$0x2]  ;;  %v1564_v44 = vld [vmem:[%s1976_s2 + $0x68] sm:$0xff]  }
  0x1a   : > { %1470 = vmatprep.subr.bf16.mxu1 %v1594_v1  ;;  %1379 = vmatpush3.bf16.msra.mxu0 %v1539_v12  ;;  %v246_v62 = vld [vmem:[#allocation2] sm:$0xf]  ;;  %v287_v63 = vor.u32 %v286_v56, %v283_v55  ;;  %v296_v6 = vor.u32 %v295_v0, %v292_v57  ;;  %vm1796_vm10 = vmand %vm207_vm1, %vm244_vm9  ;;  %vm350_vm8 = vsmask.f32 7424  ;;  %v1557_v56 = vld [vmem:[%s1976_s2 + $0xb8] sm:$0xff]  }
  0x1b   : > { %1380 = vmatprep.subr.bf16.mxu0 %v1541_v13  ;;  %v237_v52 = vor.u32 %v235_v37, %v234_v43  ;;  %v239_v53 = vrot.slane %v234_v43, 4  ;;  %v247_v3 = vsel %vm1766_vm14, %v229_v50, %v246_v62  ;;  %vm1810_vm1 = vmand %vm263_vm3, %vm303_vm12  ;;  %v260_v57 = vld [vmem:[#allocation3 + $0x8] sm:$0x1]  ;;  %v1560_v62 = vld [vmem:[%s1976_s2 + $0xb0] sm:$0xff]  }
  0x1c   : > { %248 = vst [vmem:[#allocation2] sm:$0xf] %v247_v3  ;;  %v288_v5 = vrot.slane %v287_v63, 4  ;;  %v298_v11 = vrot.slane %v296_v6, 4  ;;  %v261_v58 = vsel %vm1796_vm10, 0, %v260_v57  ;;  %v1561_v0 = vld [vmem:[%s1976_s2 + $0x70] sm:$0xff]  }
  0x1d   : > { %1471 = vmatpush3.bf16.msra.mxu1 %v1540_v14  ;;  %v238_v59 = vsel %vm1757_vm13, %v230_v51, %v237_v52  ;;  %v251_v60 = vsel %vm1725_vm5, %v239_v53, %v250_v39  ;;  %v257_v53 = vld [vmem:[#allocation3] sm:$0x1]  ;;  %262 = vst [vmem:[#allocation3 + $0x8] sm:$0x1] %v261_v58  ;;  %v321_v8 = vld [vmem:[#allocation3 + $0x10] sm:$0x2] }
  0x1e   : > { %1472 = vmatprep.subr.bf16.mxu1 %v1594_v1  ;;  %1381 = vmatpush3.bf16.msra.mxu0 %v1542_v15  ;;  %249 = vst [vmem:[#allocation2 + $0x4] sm:$0xf] %v238_v59  ;;  %252 = vst [vmem:[#allocation2 + $0x8] sm:$0x1] %v251_v60  ;;  %v297_v9 = vsel %vm1776_vm15, %v288_v5, %v296_v6  ;;  %v305_v10 = vld [vmem:[#allocation2 + $0x8] sm:$0xe]  ;;  %v312_v13 = vsel %vm1790_vm6, %v298_v11, %v311_v4 }
  0x1f   : > { %1382 = vmatprep.subr.bf16.mxu0 %v1544_v16  ;;  %v306_v12 = vsel %vm1782_vm4, %v287_v63, %v305_v10  ;;  %308 = vst [vmem:[#allocation2 + $0xc] sm:$0xf] %v297_v9  ;;  %313 = vst [vmem:[#allocation2 + $0x10] sm:$0x3] %v312_v13  ;;  %v258_v55 = vsel %vm1725_vm5, 0, %v257_v53  ;;  %v1558_v59 = vld [vmem:[%s1976_s2 + $0x78] sm:$0xff]  }
  0x20   : > { %307 = vst [vmem:[#allocation2 + $0x8] sm:$0xe] %v306_v12  ;;  %259 = vst [vmem:[#allocation3] sm:$0x1] %v258_v55  ;;  %v1559_v60 = vld [vmem:[%s1976_s2 + $0x38] sm:$0xff]   ;;  %v319_v63 = vsel %vm1751_vm11, 0, %v318_v61 }
  0x21   : > { %1473 = vmatpush3.bf16.msra.mxu1 %v1543_v17  ;;  %320 = vst [vmem:[#allocation3 + $0x8] sm:$0x2] %v319_v63  ;;  %v1562_v3 = vld [vmem:[%s1976_s2 + $0x30] sm:$0xff]   ;;  %v1563_v4 = vld [vmem:[%s1976_s2 + $0xa8] sm:$0xff]   ;;  %v1566_v6 = vld [vmem:[%s1976_s2 + $0xa0] sm:$0xff]   ;;  %v322_v10 = vsel %vm1810_vm1, 0, %v321_v8 }
  0x22   : > { %1474 = vmatprep.subr.bf16.mxu1 %v1594_v1  ;;  %1383 = vmatpush3.bf16.msra.mxu0 %v1545_v18  ;;  %v1565_v5 = vld [vmem:[%s1976_s2 + $0x28] sm:$0xff]   ;;  %v1567_v9 = vld [vmem:[%s1976_s2 + $0x60] sm:$0xff]   ;;  %323 = vst [vmem:[#allocation3 + $0x10] sm:$0x2] %v322_v10  ;;  %v1569_v12 = vld [vmem:[%s1976_s2 + $0x98] sm:$0xff]  }
  0x23   : > { %1384 = vmatprep.subr.bf16.mxu0 %v1547_v19  ;;  %v324_v17 = vld [vmem:[#allocation2] sm:$0xf]  ;;  %v1570_v13 = vld [vmem:[%s1976_s2 + $0x58] sm:$0xff]  }
  0x24   : > { %v330_v18 = vld [vmem:[#allocation2] sm:$0xe] }
  0x25   : > { %1475 = vmatpush3.bf16.msra.mxu1 %v1546_v20  ;;  %v254_v14 = vld [vmem:[#allocation2 + $0x8] sm:$0x1]  ;;  %v325_v15 = vld [vmem:[#allocation2 + $0x4] sm:$0xf] }
  0x26   : > { %1476 = vmatprep.subr.bf16.mxu1 %v1594_v1  ;;  %1385 = vmatpush3.bf16.msra.mxu0 %v1548_v21  ;;  %v255_v16 = vsel %vm1796_vm10, 0, %v254_v14  ;;  %v1287_v19 = vcombine.low %v324_v17, %v325_v15  ;;  %v1291_v20 = vcombine.low %v330_v18, %v325_v15  ;;  %v315_v28 = vld [vmem:[#allocation2 + $0x10] sm:$0x2]  ;;  %v1555_v41 = vld [vmem:[#allocation2 + $0x10] ss:$0 sps:$4 sm:$0x33]  }
  0x27   : > { %1386 = vmatprep.subr.bf16.mxu0 %v1550_v26  ;;  %256 = vst [vmem:[#allocation2 + $0x8] sm:$0x1] %v255_v16  ;;  %v316_v29 = vsel %vm1810_vm1, 0, %v315_v28  ;;  %v384_v42 = vrot.slane %v1555_v41, 1  ;;  %v367_v46 = vshll.u32 %v1555_v41, 16  ;;  %v371_v47 = vshrl.u32 %v1555_v41, 16 }
  0x28   : > { %v354_v21 = vshll.u32 %v1287_v19, 16  ;;  %v381_v31 = vrot.slane %v1291_v20, 1  ;;  %317 = vst [vmem:[#allocation2 + $0x10] sm:$0x2] %v316_v29  ;;  %v1568_v11 = vld [vmem:[%s1976_s2 + $0x20] sm:$0xff]   ;;  %v1571_v14 = vld [vmem:[%s1976_s2 + $0x18] sm:$0xff]  }
  0x29   : > { %1477 = vmatpush3.bf16.msra.mxu1 %v1549_v25  ;;  %v352_v25 = vshrl.u32 %v1287_v19, 16  ;;  %v369_v49 = vrot.slane %v367_v46, 1  ;;  %v1556_v52 = vld [vmem:[#allocation2 + $0x10] ss:$0 sps:$4 sm:$0x11]   ;;  %v1575_v18 = vld [vmem:[%s1976_s2 + $0x88] sm:$0xff]  }
  0x2a   : > { %1490 = vmatprep.subr.bf16.mxu1 %v1594_v1  ;;  %1387 = vmatpush3.bf16.msra.mxu0 %v1551_v33  ;;  %v356_v26 = vrot.slane %v354_v21, 1  ;;  %v1572_v15 = vld [vmem:[%s1976_s2 + $0x90] sm:$0xff]   ;;  %v1577_v20 = vld [vmem:[%s1976_s2 + $0x8] sm:$0xff]   ;;  %v1578_v21 = vld [vmem:[%s1976_s2 + $0x80] sm:$0xff]  }
  0x2b   : > { %v373_v51 = vor.u32 %v371_v47, %v369_v49  ;;  %1417 = vmatprep.subr.bf16.mxu0 %v1558_v59  ;;  %v1573_v16 = vld [vmem:[%s1976_s2 + $0x50] sm:$0xff]   ;;  %v1579_v22 = vld [vmem:[%s1976_s2 + $0x40] sm:$0xff]  }
  0x2c   : > { %v357_v34 = vor.u32 %v356_v26, %v352_v25  ;;  %v1574_v17 = vld [vmem:[%s1976_s2 + $0x10] sm:$0xff]   ;;  %v1580_v25 = vld [vmem:[%s1976_s2] sm:$0xff]  }
  0x2d   : > { %v793_v2 = vld [vmem:[#allocation3 + $0x10] sm:$0x3] }
  0x2e   : > { %v1553_v30 = vld [vmem:[#allocation2 + $0x8] sm:$0xff]  }
  0x2f   : > { %v382_v33 = vrot.slane %v1553_v30, 1  ;;  %v359_v35 = vshll.u32 %v1553_v30, 16  ;;  %v363_v39 = vshrl.u32 %v1553_v30, 16 }
  0x31   : > { %v383_v36 = vsel %vm380_vm7, %v381_v31, %v382_v33  ;;  %v361_v37 = vrot.slane %v359_v35, 1  ;;  %v385_v48 = vsel %vm380_vm7, %v382_v33, %v384_v42  ;;  %v1316_v35 = vld [vmem:[%s1977_s3] ss:$0 sm:$0xff] }
  0x32   : > { %1479 = vmatmul.mubr.bf16.vlgmr.msra.gmra.mxu1 %v383_v36 }
  0x33   : > { %v362_v40 = vsel %vm350_vm8, %v357_v34, %v361_v37  ;;  %1482 = vmatprep.mubr.msk.bf16.mxu1 %vm1595_vm0, %v1594_v1  ;;  %v365_v43 = vor.u32 %v363_v39, %v361_v37  ;;  %1491 = vmatpush3.bf16.msra.mxu1 %v1557_v56 }
  0x34   : > { %613 = vmatprep.mubr.bf16.mxu0 %v362_v40  ;;  %1492 = vmatprep.subr.bf16.mxu1 %v1594_v1  ;;  %v1919_v40 = vld [vmem:[%s1977_s3 + $0x1] ss:$0 sm:$0xff] }
  0x35   : > { %614 = vmatmul.mubr.bf16.vlgmr.msra.gmra.mxu0 %v1287_v19  ;;  %v370_v50 = vsel %vm350_vm8, %v365_v43, %v369_v49  ;;  %v1576_v19 = vld [vmem:[%s1976_s2 + $0x48] sm:$0xff]  }
  0x36   : > { %621 = vmatprep.mubr.bf16.mxu0 %v370_v50  ;;  %1418 = vmatpush3.bf16.msra.mxu0 %v1559_v60 }
  0x37   : > { %1493 = vmatpush3.bf16.msra.mxu1 %v1560_v62  ;;  %1419 = vmatprep.subr.bf16.mxu0 %v1561_v0 }
  0x38   : > { %1494 = vmatprep.subr.bf16.mxu1 %v1594_v1 }
  0x3a   : > { %1483 = vmatmul.mubr.bf16.gmra.mxu1 %v385_v48  ;;  %1420 = vmatpush3.bf16.msra.mxu0 %v1562_v3 }
  0x3b   : > { %1486 = vmatprep.mubr.msk.bf16.mxu1 %vm1595_vm0, %v1594_v1  ;;  %1495 = vmatpush3.bf16.msra.mxu1 %v1563_v4 }
  0x3c   : > { %1496 = vmatprep.subr.bf16.mxu1 %v1594_v1  ;;  %1421 = vmatprep.subr.bf16.mxu0 %v1564_v44 }
  0x3d   : > { %622 = vmatmul.mubr.bf16.gmra.mxu0 %v1553_v30 }
  0x3e   : > { %629 = vmatprep.mubr.bf16.mxu0 %v373_v51  ;;  %1422 = vmatpush3.bf16.msra.mxu0 %v1565_v5 }
  0x3f   : > { %1497 = vmatpush3.bf16.msra.mxu1 %v1566_v6  ;;  %1423 = vmatprep.subr.bf16.mxu0 %v1567_v9 }
  0x40   : > { %1498 = vmatprep.subr.bf16.mxu1 %v1594_v1 }
  0x42   : > { %1487 = vmatmul.mubr.bf16.gmra.mxu1 %v384_v42  ;;  %1424 = vmatpush3.bf16.msra.mxu0 %v1568_v11 }
  0x43   : > { %1506 = vmatprep.mubr.msk.bf16.mxu1 %vm1595_vm0, %v1594_v1  ;;  %1499 = vmatpush3.bf16.msra.mxu1 %v1569_v12  ;;  %v744_v12 = vld [vmem:[#allocation3] sm:$0xf] }
  0x44   : > { %1500 = vmatprep.subr.bf16.mxu1 %v1594_v1  ;;  %1425 = vmatprep.subr.bf16.mxu0 %v1570_v13 }
  0x45   : > { %630 = vmatmul.mubr.bf16.gmra.mxu0 %v1556_v52 }
  0x46   : > { %1426 = vmatpush3.bf16.msra.mxu0 %v1571_v14 }
  0x47   : > { %1501 = vmatpush3.bf16.msra.mxu1 %v1572_v15  ;;  %1427 = vmatprep.subr.bf16.mxu0 %v1573_v16 }
  0x48   : > { %1502 = vmatprep.subr.bf16.mxu1 %v1594_v1 }
  0x4a   : > { %1428 = vmatpush3.bf16.msra.mxu0 %v1574_v17 }
  0x4b   : > { %1503 = vmatpush3.bf16.msra.mxu1 %v1575_v18  ;;  %1429 = vmatprep.subr.bf16.mxu0 %v1576_v19 }
  0x4c   : > { %1504 = vmatprep.subr.bf16.mxu1 %v1594_v1 }
  0x4e   : > { %1430 = vmatpush3.bf16.msra.mxu0 %v1577_v20 }
  0x4f   : > { %1505 = vmatpush3.bf16.msra.mxu1 %v1578_v21  ;;  %1431 = vmatprep.subr.bf16.mxu0 %v1579_v22 }
  0x52   : > { %1432 = vmatpush3.bf16.msra.mxu0 %v1580_v25 }
  0xf2   : > { %v671_v26 = vpop.f32.mrf.mxu1 }
  0xf4   : > { %v1480_v28 = vpop.f32.mrf.mxu1 }
  0xf5   : > { %v1388_v29 = vpop.f32.mrf.mxu0  ;;  %v748_v28 = vld [vmem:[#allocation3 + $0x8] sm:$0x1] }
  0xf6   : > { %v674_v30 = vpop.f32.mrf.mxu1 }
  0xf7   : > { %v1389_v31 = vpop.f32.mrf.mxu0 }
  0xf8   : > { %v1390_v33 = vadd.f32 %v1389_v31, %v1388_v29  ;;  %v1481_v34 = vpop.f32.mrf.mxu1 }
  0xf9   : > { %v1391_v36 = vpop.f32.mrf.mxu0 }
  0xfa   : > { %v672_v37 = vadd.f32 %v1390_v33, %v671_v26  ;;  %v679_v39 = vpop.f32.mrf.mxu1 }
  0xfb   : > { %v1392_v41 = vpop.f32.mrf.mxu0 }
  0xfc   : > { %v698_v42 = vmul.f32 %v1316_v35, %v672_v37  ;;  %v1393_v43 = vadd.f32 %v1392_v41, %v1391_v36  ;;  %v1484_v46 = vpop.f32.mrf.mxu1 }
  0xfd   : > { %v1394_v47 = vpop.f32.mrf.mxu0 }
  0xfe   : > { %v708_v48 = vadd.f32 %v1919_v40, %v698_v42  ;;  %v675_v49 = vadd.f32 %v1393_v43, %v674_v30  ;;  %v682_v50 = vpop.f32.mrf.mxu1 }
  0xff   : > { %v1395_v51 = vpop.f32.mrf.mxu0 }
 0x100   : > { %v713_v52 = vmax.f32 %v708_v48, 0.0  ;;  %v699_v53 = vmul.f32 %v1316_v35, %v675_v49  ;;  %v1396_v55 = vadd.f32 %v1395_v51, %v1394_v47  ;;  %v1485_v56 = vpop.f32.mrf.mxu1 }
 0x101   : > { %v1397_v57 = vpop.f32.mrf.mxu0 }
 0x102   : > { %v1367_v58 = vpack.c.bf16 %v713_v52, %v713_v52  ;;  %v709_v59 = vadd.f32 %v1919_v40, %v699_v53  ;;  %v680_v60 = vadd.f32 %v1396_v55, %v679_v39  ;;  %v687_v61 = vpop.f32.mrf.mxu1 }
 0x103   : > { %v1398_v62 = vpop.f32.mrf.mxu0 }
 0x104   : > { %v725_v63 = vshrl.u32 %v1367_v58, 16  ;;  %v714_v0 = vmax.f32 %v709_v59, 0.0  ;;  %v700_v3 = vmul.f32 %v1316_v35, %v680_v60  ;;  %v1488_v4 = vpop.f32.mrf.mxu1  ;;  %v1399_v44 = vadd.f32 %v1398_v62, %v1397_v57 }
 0x105   : > { %v1400_v5 = vpop.f32.mrf.mxu0  ;;  %v728_v8 = vshll.u32 %v1367_v58, 16 }
 0x106   : > { %v727_v6 = vrot.slane %v725_v63, 7  ;;  %v1368_v9 = vpack.c.bf16 %v714_v0, %v714_v0  ;;  %v710_v10 = vadd.f32 %v1919_v40, %v700_v3  ;;  %v690_v11 = vpop.f32.mrf.mxu1  ;;  %v683_v13 = vadd.f32 %v1399_v44, %v682_v50  ;;  %v789_v50 = vld [vmem:[#allocation3 + $0x8] sm:$0xe] }
 0x107   : > { %v1401_v14 = vpop.f32.mrf.mxu0 }
 0x108   : > { %v730_v15 = vor.u32 %v728_v8, %v727_v6  ;;  %v733_v16 = vshrl.u32 %v1368_v9, 16  ;;  %v1489_v17 = vpop.f32.mrf.mxu1  ;;  %v715_v18 = vmax.f32 %v710_v10, 0.0  ;;  %v701_v19 = vmul.f32 %v1316_v35, %v683_v13 }
 0x109   : > { %v1402_v20 = vadd.f32 %v1401_v14, %v1400_v5  ;;  %v1403_v21 = vpop.f32.mrf.mxu0  ;;  %v736_v26 = vshll.u32 %v1368_v9, 16  ;;  %v731_v34 = vrot.slane %v727_v6, 4 }
 0x10a   : > { %v745_v22 = vsel %vm1766_vm14, %v730_v15, %v744_v12  ;;  %v735_v25 = vrot.slane %v733_v16, 7  ;;  %v1369_v29 = vpack.c.bf16 %v715_v18, %v715_v18  ;;  %v711_v30 = vadd.f32 %v1919_v40, %v701_v19 }
 0x10b   : > { %746 = vst [vmem:[#allocation3] sm:$0xf] %v745_v22  ;;  %v688_v31 = vadd.f32 %v1402_v20, %v687_v61  ;;  %v1404_v33 = vpop.f32.mrf.mxu0 }
 0x10c   : > { %v738_v36 = vor.u32 %v736_v26, %v735_v25  ;;  %v740_v37 = vrot.slane %v735_v25, 4  ;;  %v762_v39 = vshrl.u32 %v1369_v29, 16  ;;  %v716_v41 = vmax.f32 %v711_v30, 0.0 }
 0x10d   : > { %v702_v42 = vmul.f32 %v1316_v35, %v688_v31  ;;  %v765_v47 = vshll.u32 %v1369_v29, 16 }
 0x10e   : > { %v739_v43 = vsel %vm1757_vm13, %v731_v34, %v738_v36  ;;  %v749_v54 = vsel %vm1725_vm5, %v740_v37, %v748_v28  ;;  %v764_v46 = vrot.slane %v762_v39, 7  ;;  %v1370_v48 = vpack.c.bf16 %v716_v41, %v716_v41 }
 0x10f   : > { %747 = vst [vmem:[#allocation3 + $0x4] sm:$0xf] %v739_v43  ;;  %750 = vst [vmem:[#allocation3 + $0x8] sm:$0x1] %v749_v54  ;;  %v712_v49 = vadd.f32 %v1919_v40, %v702_v42  ;;  %v1352_v43 = vld [vmem:[%s1977_s3 + $0x2] ss:$0 sm:$0xff] }
 0x110   : > { %v767_v51 = vor.u32 %v765_v47, %v764_v46  ;;  %v770_v52 = vshrl.u32 %v1370_v48, 16  ;;  %v773_v56 = vshll.u32 %v1370_v48, 16  ;;  %v768_v27 = vrot.slane %v764_v46, 4  ;;  %v1353_v47 = vld [vmem:[%s1977_s3 + $0x3] ss:$0 sm:$0xff] }
 0x111   : > { %v717_v53 = vmax.f32 %v712_v49, 0.0 }
 0x112   : > { %v790_v35 = vsel %vm1782_vm4, %v767_v51, %v789_v50  ;;  %v772_v55 = vrot.slane %v770_v52, 7  ;;  %v796_v62 = vld [vmem:[#allocation3] sm:$0xf] }
 0x113   : > { %791 = vst [vmem:[#allocation3 + $0x8] sm:$0xe] %v790_v35  ;;  %v1371_v57 = vpack.c.bf16 %v717_v53, %v717_v53  ;;  %v802_v6 = vld [vmem:[#allocation3] sm:$0xe] }
 0x114   : > { %v775_v58 = vor.u32 %v773_v56, %v772_v55  ;;  %v777_v3 = vrot.slane %v772_v55, 4 }
 0x115   : > { %v779_v59 = vshrl.u32 %v1371_v57, 16  ;;  %v782_v60 = vshll.u32 %v1371_v57, 16 }
 0x116   : > { %v797_v61 = vld [vmem:[#allocation3 + $0x4] sm:$0xf]  ;;  %v776_v40 = vsel %vm1757_vm13, %v768_v27, %v775_v58 }
 0x117   : > { %v1323_v63 = vcombine.low %v796_v62, %v797_v61  ;;  %792 = vst [vmem:[#allocation3 + $0xc] sm:$0xf] %v776_v40  ;;  %v781_v0 = vrot.slane %v779_v59, 7  ;;  %v1327_v9 = vcombine.low %v802_v6, %v797_v61 }
 0x119   : > { %v784_v4 = vor.u32 %v782_v60, %v781_v0  ;;  %v825_v44 = vshll.u32 %v1323_v63, 16  ;;  %v851_v12 = vrot.slane %v1327_v9, 1  ;;  %v823_v14 = vshrl.u32 %v1323_v63, 16 }
 0x11b   : > { %v785_v5 = vsel %vm1757_vm13, %v777_v3, %v784_v4  ;;  %v827_v11 = vrot.slane %v825_v44, 1  ;;  %v1196_v4 = vrot.slane %v1736_v32, 6 }
 0x11c   : > { %v794_v8 = vsel %vm1790_vm6, %v785_v5, %v793_v2  ;;  %v1197_v5 = vrot.slane %v1743_v38, 6 }
 0x11d   : > { %795 = vst [vmem:[#allocation3 + $0x10] sm:$0x3] %v794_v8  ;;  %v828_v17 = vor.u32 %v827_v11, %v823_v14 }
 0x11e   : > { %v1581_v10 = vld [vmem:[#allocation3 + $0x8] sm:$0xff]   ;;  %v1198_v32 = vsel %vm309_vm2, %v1196_v4, %v1197_v5 }
 0x11f   : > { %v852_v13 = vrot.slane %v1581_v10, 1  ;;  %v830_v15 = vshll.u32 %v1581_v10, 16  ;;  %v834_v7 = vshrl.u32 %v1581_v10, 16 }
 0x121   : > { %v853_v16 = vsel %vm380_vm7, %v851_v12, %v852_v13  ;;  %v832_v18 = vrot.slane %v830_v15, 1 }
 0x122   : > { %1507 = vmatmul.mubr.bf16.vlgmr.msra.gmra.mxu1 %v853_v16 }
 0x123   : > { %v833_v45 = vsel %vm350_vm8, %v828_v17, %v832_v18  ;;  %1510 = vmatprep.mubr.msk.bf16.mxu1 %vm1595_vm0, %v1594_v1  ;;  %v836_v22 = vor.u32 %v834_v7, %v832_v18 }
 0x124   : > { %v1584_v19 = vld [vmem:[#allocation3 + $0x10] ss:$0 sps:$4 sm:$0x33]   ;;  %1083 = vmatprep.mubr.bf16.mxu0 %v833_v45 }
 0x125   : > { %1084 = vmatmul.mubr.bf16.vlgmr.msra.gmra.mxu0 %v1323_v63  ;;  %v838_v20 = vshll.u32 %v1584_v19, 16  ;;  %v854_v21 = vrot.slane %v1584_v19, 1  ;;  %v842_v29 = vshrl.u32 %v1584_v19, 16  ;;  %v1585_v31 = vld [vmem:[#allocation3 + $0x10] ss:$0 sps:$4 sm:$0x11]  }
 0x127   : > { %v840_v25 = vrot.slane %v838_v20, 1  ;;  %v855_v28 = vsel %vm380_vm7, %v852_v13, %v854_v21 }
 0x129   : > { %v841_v26 = vsel %vm350_vm8, %v836_v22, %v840_v25  ;;  %v844_v30 = vor.u32 %v842_v29, %v840_v25 }
 0x12a   : > { %1091 = vmatprep.mubr.bf16.mxu0 %v841_v26  ;;  %1511 = vmatmul.mubr.bf16.gmra.mxu1 %v855_v28 }
 0x12b   : > { %1514 = vmatprep.mubr.msk.bf16.mxu1 %vm1595_vm0, %v1594_v1 }
 0x12d   : > { %1092 = vmatmul.mubr.bf16.gmra.mxu0 %v1581_v10 }
 0x12e   : > { %1099 = vmatprep.mubr.bf16.mxu0 %v844_v30 }
 0x132   : > { %1515 = vmatmul.mubr.bf16.gmra.mxu1 %v854_v21 }
 0x135   : > { %1100 = vmatmul.mubr.bf16.gmra.mxu0 %v1585_v31 }
 0x1e2   : > { %v1141_v33 = vpop.f32.mrf.mxu1 }
 0x1e4   : > { %v1508_v34 = vpop.f32.mrf.mxu1 }
 0x1e5   : > { %v1433_v36 = vpop.f32.mrf.mxu0 }
 0x1e6   : > { %v1144_v37 = vpop.f32.mrf.mxu1 }
 0x1e7   : > { %v1434_v39 = vpop.f32.mrf.mxu0 }
 0x1e8   : > { %v1435_v41 = vadd.f32 %v1434_v39, %v1433_v36  ;;  %v1509_v42 = vpop.f32.mrf.mxu1 }
 0x1e9   : > { %v1436_v54 = vpop.f32.mrf.mxu0 }
 0x1ea   : > { %v1142_v46 = vadd.f32 %v1435_v41, %v1141_v33  ;;  %v1149_v1 = vpop.f32.mrf.mxu1 }
 0x1eb   : > { %v1437_v48 = vpop.f32.mrf.mxu0 }
 0x1ec   : > { %v1168_v49 = vmul.f32 %v1352_v43, %v1142_v46  ;;  %v1438_v50 = vadd.f32 %v1437_v48, %v1436_v54  ;;  %v1512_v51 = vpop.f32.mrf.mxu1 }
 0x1ed   : > { %v1439_v52 = vpop.f32.mrf.mxu0 }
 0x1ee   : > { %v1178_v53 = vadd.f32 %v1353_v47, %v1168_v49  ;;  %v1145_v35 = vadd.f32 %v1438_v50, %v1144_v37  ;;  %v1152_v55 = vpop.f32.mrf.mxu1 }
 0x1ef   : > { %v1440_v56 = vpop.f32.mrf.mxu0 }
 0x1f0   : > { %v1185_v57 = vadd.f32 %v1178_v53, %v1712_v23  ;;  %v1169_v27 = vmul.f32 %v1352_v43, %v1145_v35  ;;  %v1441_v58 = vadd.f32 %v1440_v56, %v1439_v52  ;;  %v1513_v59 = vpop.f32.mrf.mxu1 }
 0x1f1   : > { %v1442_v60 = vpop.f32.mrf.mxu0 }
 0x1f2   : > { %v1187_v61 = vmax.f32 %v1185_v57, 0.0  ;;  %v1179_v62 = vadd.f32 %v1353_v47, %v1169_v27  ;;  %v1150_v40 = vadd.f32 %v1441_v58, %v1149_v1  ;;  %v1157_v63 = vpop.f32.mrf.mxu1 }
 0x1f3   : > { %v1443_v0 = vpop.f32.mrf.mxu0 }
 0x1f4   : > { %1189 = vst [vmem:[%s1960_s9] sm:$0xff] %v1187_v61  ;;  %v1186_v23 = vadd.f32 %v1179_v62, %v1715_v24  ;;  %v1170_v3 = vmul.f32 %v1352_v43, %v1150_v40  ;;  %v1444_v2 = vadd.f32 %v1443_v0, %v1442_v60  ;;  %v1516_v44 = vpop.f32.mrf.mxu1 }
 0x1f5   : > { %v1445_v6 = vpop.f32.mrf.mxu0 }
 0x1f6   : > { %v1188_v8 = vmax.f32 %v1186_v23, 0.0  ;;  %v1180_v9 = vadd.f32 %v1353_v47, %v1170_v3  ;;  %v1153_v10 = vadd.f32 %v1444_v2, %v1152_v55  ;;  %v1160_v11 = vpop.f32.mrf.mxu1 }
 0x1f7   : > { %v1446_v12 = vpop.f32.mrf.mxu0 }
 0x1f8   : > { %1190 = vst [vmem:[%s1960_s9 + $0x8] sm:$0xff] %v1188_v8  ;;  %v1202_v13 = vadd.f32 %v1196_v4, %v1180_v9  ;;  %v1171_v14 = vmul.f32 %v1352_v43, %v1153_v10  ;;  %v1447_v15 = vadd.f32 %v1446_v12, %v1445_v6  ;;  %v1517_v24 = vpop.f32.mrf.mxu1 }
 0x1f9   : > { %v1448_v16 = vpop.f32.mrf.mxu0 }
 0x1fa   : > { %v1205_v17 = vmax.f32 %v1202_v13, 0.0  ;;  %v1181_v18 = vadd.f32 %v1353_v47, %v1171_v14  ;;  %v1158_v38 = vadd.f32 %v1447_v15, %v1157_v63 }
 0x1fb   : > { %v1449_v45 = vpop.f32.mrf.mxu0 }
 0x1fc   : > { %1356 = vst [vmem:[%s1960_s9 + $0xe] sm:$0xfc] %v1205_v17  ;;  %v1203_v19 = vadd.f32 %v1198_v32, %v1181_v18  ;;  %v1172_v7 = vmul.f32 %v1352_v43, %v1158_v38 }
 0x1fe   : > { %v1206_v20 = vmax.f32 %v1203_v19, 0.0  ;;  %v1182_v21 = vadd.f32 %v1353_v47, %v1172_v7 }
 0x200   : > { %1357 = vst [vmem:[%s1960_s9 + $0x16] sm:$0xff] %v1206_v20  ;;  %v1204_v22 = vadd.f32 %v1197_v5, %v1182_v21 }
 0x202   : > { %v1207_v25 = vmax.f32 %v1204_v22, 0.0 }
 0x204   : > { %1358 = vst [vmem:[%s1960_s9 + $0x1e] sm:$0x3] %v1207_v25 }
 0x205 PF: > { %s14_s15 = sadd.s32 1, %s1592_s15  }
 0x206   : > { %p11_p4 = scmp.ge.s32.totalorder %s14_s15, 4  }
 0x208   :  { %13 = sbr.rel (!%p11_p4) target bundleno = 1 (0x1), region = 68 }

</bundles_post_ra>
